<compile_context>
chip_gen: v6e
topology: v6e:2x2x1
jax: 0.10.0
libtpu: 0.0.40
codegen_flags: <defaults>
</compile_context>

<pallas_src>
import functools
import math

import jax
import jax.numpy as jnp
from jax.experimental import pallas as pl
from jax.experimental.pallas import tpu as pltpu


# -----------------------------------------------------------------------------
# Helpers
# -----------------------------------------------------------------------------
_GELU_C = math.sqrt(2.0 / math.pi)


def _gelu_f32(y):
    """tanh-approximate GELU in f32 (matches TE's fused gelu epilogue)."""
    return 0.5 * y * (1.0 + jnp.tanh(_GELU_C * (y + 0.044715 * y * y * y)))


def _round_up(x, m):
    return -(-x // m) * m


def _choose_row_tile(M, max_tile=256):
    """Row tile: multiple of 8, <= max_tile, and >=2 grid steps when M allows
    (keeps both v7x TensorCores busy via the 'parallel' M grid axis)."""
    if M <= 8:
        return max(M, 1)
    half = _round_up(-(-M // 2), 8)
    return max(8, min(max_tile, half, _round_up(M, 8)))


def _choose_elementwise_row_tile(M, N, itemsize=4, budget=8 << 20):
    """Row tile for mem-bound elementwise kernels: in+out, double-buffered."""
    cap = max(8, (budget // max(1, 4 * N * itemsize)) // 8 * 8)
    return _choose_row_tile(M, max_tile=min(1024, cap))


def _choose_linear_tiles(M, K, N):
    tm = _choose_row_tile(M, max_tile=512)
    # Lane tile: multiple of 128 when possible (lane-dense stores), else full N.
    tn = min(N, 512) if N % 128 == 0 else N
    # Contraction tile must divide K exactly (accumulation correctness).
    tk = K
    for cand in (1024, 512, 256, 128):
        if K % cand == 0 and K >= cand:
            tk = cand
            break
    return tm, tn, tk


def _vmem_limit(estimate_bytes):
    # Leave headroom but stay well under v7x's 64 MiB physical VMEM per TC.
    return int(min(max(2 * estimate_bytes, 8 << 20), 40 << 20))


# -----------------------------------------------------------------------------
# Fully-fused 2-layer MLP kernel:  y = gelu(x @ W1 + b1) @ W2 + b2
# -----------------------------------------------------------------------------
def _fused_mlp_kernel(x_ref, w1_ref, *rest, has_b1, has_b2):
    rest = list(rest)
    b1_ref = rest.pop(0) if has_b1 else None
    w2_ref = rest.pop(0)
    b2_ref = rest.pop(0) if has_b2 else None
    (o_ref,) = rest

    # Hidden activation stays in registers/VMEM temporaries -> no HBM round trip.
    h = jnp.dot(x_ref[...], w1_ref[...], preferred_element_type=jnp.float32)
    if has_b1:
        h = h + b1_ref[...]
    h = _gelu_f32(h)
    y = jnp.dot(h.astype(w2_ref.dtype), w2_ref[...],
                preferred_element_type=jnp.float32)
    if has_b2:
        y = y + b2_ref[...]
    o_ref[...] = y.astype(o_ref.dtype)


def fused_mlp(x2d, w1, b1, w2, b2, *, compute_dtype=jnp.bfloat16, tm=None):
    """One Pallas kernel for linear[+bias]+gelu+linear[+bias]."""
    M, K1 = x2d.shape
    K1b, N1 = w1.shape
    N1b, N2 = w2.shape
    assert K1 == K1b and N1 == N1b
    out_dtype = x2d.dtype
    has_b1 = b1 is not None
    has_b2 = b2 is not None

    tm = tm or _choose_row_tile(M)
    grid = (pl.cdiv(M, tm),)

    inputs = [x2d.astype(compute_dtype), w1.astype(compute_dtype)]
    in_specs = [
        pl.BlockSpec((tm, K1), lambda i: (i, 0)),
        pl.BlockSpec((K1, N1), lambda i: (0, 0)),   # resident across the grid
    ]
    if has_b1:
        inputs.append(b1.reshape(1, N1).astype(jnp.float32))
        in_specs.append(pl.BlockSpec((1, N1), lambda i: (0, 0)))
    inputs.append(w2.astype(compute_dtype))
    in_specs.append(pl.BlockSpec((N1, N2), lambda i: (0, 0)))
    if has_b2:
        inputs.append(b2.reshape(1, N2).astype(jnp.float32))
        in_specs.append(pl.BlockSpec((1, N2), lambda i: (0, 0)))

    in_bytes = jnp.dtype(compute_dtype).itemsize
    out_bytes = jnp.dtype(out_dtype).itemsize
    vmem_est = (2 * tm * K1 * in_bytes                  # x tile, double-buffered
                + (K1 * N1 + N1 * N2) * in_bytes        # resident weights
                + (N1 + N2) * 4                         # resident biases (f32)
                + 2 * tm * N2 * out_bytes               # out tile, double-buffered
                + 2 * tm * N1 * 4)                      # f32 hidden temporaries
    cost = pl.CostEstimate(
        flops=2 * M * (K1 * N1 + N1 * N2),
        transcendentals=M * N1,
        bytes_accessed=(M * K1 * in_bytes + M * N2 * out_bytes
                        + (K1 * N1 + N1 * N2) * in_bytes + (N1 + N2) * 4),
    )

    kernel = functools.partial(_fused_mlp_kernel, has_b1=has_b1, has_b2=has_b2)
    return pl.pallas_call(
        kernel,
        out_shape=jax.ShapeDtypeStruct((M, N2), out_dtype),
        grid_spec=pltpu.PrefetchScalarGridSpec(
            num_scalar_prefetch=0,
            grid=grid,
            in_specs=in_specs,
            out_specs=pl.BlockSpec((tm, N2), lambda i: (i, 0)),
        ),
        compiler_params=pltpu.CompilerParams(
            dimension_semantics=("parallel",),
            vmem_limit_bytes=_vmem_limit(vmem_est),
        ),
        cost_estimate=cost,
    )(*inputs)


# -----------------------------------------------------------------------------
# Fallback: single fused linear (+ bias) (+ gelu), tiled over M / N / K
# -----------------------------------------------------------------------------
def _fused_linear_kernel(x_ref, w_ref, *rest, activation, has_bias):
    rest = list(rest)
    b_ref = rest.pop(0) if has_bias else None
    o_ref, acc_ref = rest
    k = pl.program_id(2)

    @pl.when(k == 0)
    def _():
        acc_ref[...] = jnp.zeros_like(acc_ref)

    acc_ref[...] += jnp.dot(x_ref[...], w_ref[...],
                            preferred_element_type=jnp.float32)

    @pl.when(k == pl.num_programs(2) - 1)
    def _():
        y = acc_ref[...]
        if has_bias:
            y = y + b_ref[...]
        if activation == "gelu":
            y = _gelu_f32(y)
        o_ref[...] = y.astype(o_ref.dtype)


def fused_linear(x2d, w, b=None, *, activation=None,
                 compute_dtype=jnp.bfloat16, tm=None, tn=None, tk=None):
    """y = activation(x2d @ w [+ b]) in one tiled Pallas kernel."""
    M, K = x2d.shape
    K2, N = w.shape
    assert K == K2
    out_dtype = x2d.dtype
    has_bias = b is not None

    dtm, dtn, dtk = _choose_linear_tiles(M, K, N)
    tm, tn, tk = tm or dtm, tn or dtn, tk or dtk
    assert K % tk == 0, "contraction tile must divide K exactly"
    grid = (pl.cdiv(M, tm), pl.cdiv(N, tn), K // tk)

    inputs = [x2d.astype(compute_dtype), w.astype(compute_dtype)]
    in_specs = [
        pl.BlockSpec((tm, tk), lambda i, j, k: (i, k)),
        pl.BlockSpec((tk, tn), lambda i, j, k: (k, j)),
    ]
    if has_bias:
        inputs.append(b.reshape(1, N).astype(jnp.float32))
        in_specs.append(pl.BlockSpec((1, tn), lambda i, j, k: (0, j)))

    in_bytes = jnp.dtype(compute_dtype).itemsize
    out_bytes = jnp.dtype(out_dtype).itemsize
    vmem_est = (2 * (tm * tk + tk * tn) * in_bytes      # x/w tiles double-buffered
                + tm * tn * 4                           # f32 accumulator scratch
                + 2 * tm * tn * out_bytes               # out tile double-buffered
                + (2 * tn * 4 if has_bias else 0))
    cost = pl.CostEstimate(
        flops=2 * M * N * K,
        transcendentals=(M * N if activation == "gelu" else 0),
        bytes_accessed=((M * K + K * N) * in_bytes + M * N * out_bytes
                        + (N * 4 if has_bias else 0)),
    )

    kernel = functools.partial(_fused_linear_kernel,
                               activation=activation, has_bias=has_bias)
    return pl.pallas_call(
        kernel,
        out_shape=jax.ShapeDtypeStruct((M, N), out_dtype),
        grid_spec=pltpu.PrefetchScalarGridSpec(
            num_scalar_prefetch=0,
            grid=grid,
            in_specs=in_specs,
            out_specs=pl.BlockSpec((tm, tn), lambda i, j, k: (i, j)),
            scratch_shapes=[pltpu.VMEM((tm, tn), jnp.float32)],
        ),
        compiler_params=pltpu.CompilerParams(
            dimension_semantics=("parallel", "parallel", "arbitrary"),
            vmem_limit_bytes=_vmem_limit(vmem_est),
        ),
        cost_estimate=cost,
    )(*inputs)


# -----------------------------------------------------------------------------
# Fallback standalone elementwise kernels (row-tiled, mem-bound)
# -----------------------------------------------------------------------------
def _gelu_kernel(x_ref, o_ref):
    o_ref[...] = _gelu_f32(x_ref[...].astype(jnp.float32)).astype(o_ref.dtype)


def _bias_kernel(x_ref, b_ref, o_ref):
    o_ref[...] = (x_ref[...].astype(jnp.float32) + b_ref[...]).astype(o_ref.dtype)


def gelu_pallas(x2d, *, tm=None):
    M, N = x2d.shape
    tm = tm or _choose_elementwise_row_tile(M, N, x2d.dtype.itemsize)
    return pl.pallas_call(
        _gelu_kernel,
        out_shape=jax.ShapeDtypeStruct((M, N), x2d.dtype),
        grid_spec=pltpu.PrefetchScalarGridSpec(
            num_scalar_prefetch=0,
            grid=(pl.cdiv(M, tm),),
            in_specs=[pl.BlockSpec((tm, N), lambda i: (i, 0))],
            out_specs=pl.BlockSpec((tm, N), lambda i: (i, 0)),
        ),
        compiler_params=pltpu.CompilerParams(dimension_semantics=("parallel",)),
    )(x2d)


def bias_pallas(x2d, b, *, tm=None):
    M, N = x2d.shape
    tm = tm or _choose_elementwise_row_tile(M, N, x2d.dtype.itemsize)
    return pl.pallas_call(
        _bias_kernel,
        out_shape=jax.ShapeDtypeStruct((M, N), x2d.dtype),
        grid_spec=pltpu.PrefetchScalarGridSpec(
            num_scalar_prefetch=0,
            grid=(pl.cdiv(M, tm),),
            in_specs=[
                pl.BlockSpec((tm, N), lambda i: (i, 0)),
                pl.BlockSpec((1, N), lambda i: (0, 0)),   # resident
            ],
            out_specs=pl.BlockSpec((tm, N), lambda i: (i, 0)),
        ),
        compiler_params=pltpu.CompilerParams(dimension_semantics=("parallel",)),
    )(x2d, b.reshape(1, N).astype(jnp.float32))


# -----------------------------------------------------------------------------
# Minimal fusible-op / fuser / Sequential framework (mirrors TE semantics)
# -----------------------------------------------------------------------------
class FusibleOperation:
    pass


class BasicLinear(FusibleOperation):
    def __init__(self, in_features, out_features, key):
        k = 1.0 / math.sqrt(in_features)
        # weight stored as (in, out) — transpose of torch layout (see header).
        self.weight = jax.random.uniform(
            key, (in_features, out_features), jnp.float32, minval=-k, maxval=k)

    def __call__(self, x2d):
        # bias=None path: no zero-bias array, no extra DMA, no epilogue add.
        return fused_linear(x2d, self.weight, None, activation=None)


class Bias(FusibleOperation):
    def __init__(self, features, key):
        k = 1.0 / math.sqrt(features)
        self.bias = jax.random.uniform(
            key, (features,), jnp.float32, minval=-k, maxval=k)

    def __call__(self, x2d):
        return bias_pallas(x2d, self.bias)


class GELU(FusibleOperation):
    def __call__(self, x2d):
        return gelu_pallas(x2d)


class OperationFuser:
    """Fuses consecutive fusible ops.

    Recognized patterns (greedy):
      Linear [+Bias] +GELU +Linear [+Bias]  ->  one Pallas kernel (fused_mlp)
      Linear [+Bias] [+GELU]                ->  one Pallas kernel (fused_linear)
      Bias / GELU standalone                ->  row-tiled elementwise kernels
    """

    # Resident-weight budget for the single-kernel MLP path (safe on all chips,
    # including v7x's 64 MiB VMEM per TensorCore).
    _MLP_WEIGHT_BUDGET_BYTES = 8 << 20

    def __init__(self, ops, fuse_ops=True):
        self.ops = list(ops)
        self.fuse_ops = fuse_ops

    @staticmethod
    def _match_linear(ops, i):
        """Greedily consume Linear [+Bias] [+GELU] starting at index i."""
        if i >= len(ops) or not isinstance(ops[i], BasicLinear):
            return None
        w, bias, act = ops[i].weight, None, None
        j = i + 1
        if j < len(ops) and isinstance(ops[j], Bias):
            bias = ops[j].bias
            j += 1
        if j < len(ops) and isinstance(ops[j], GELU):
            act = "gelu"
            j += 1
        return w, bias, act, j

    def __call__(self, x2d):
        ops = self.ops
        i = 0
        while i < len(ops):
            m1 = self._match_linear(ops, i) if self.fuse_ops else None
            if m1 is None:
                x2d = ops[i](x2d)
                i += 1
                continue
            w1, b1, act1, j = m1
            if act1 == "gelu":
                m2 = self._match_linear(ops, j)
                if m2 is not None:
                    w2, b2, act2, j2 = m2
                    weight_bytes = 2 * (int(w1.size) + int(w2.size))  # bf16 resident
                    if act2 is None and weight_bytes <= self._MLP_WEIGHT_BUDGET_BYTES:
                        x2d = fused_mlp(x2d, w1, b1, w2, b2)
                        i = j2
                        continue
            x2d = fused_linear(x2d, w1, b1, activation=act1)
            i = j
        return x2d


class Sequential:
    """JAX/Pallas analogue of transformer_engine.pytorch.ops.Sequential."""
    # TODO(synk): only the forward pass is implemented; TE's autograd / FP8
    # recipe plumbing inside FusibleOperation is out of scope here.

    def __init__(self, *modules):
        self._modules = list(modules)
        self._module_groups = None

    @staticmethod
    def _make_module_groups(modules):
        groups, fusible = [], []

        def maybe_add_fuser():
            nonlocal fusible
            if fusible:
                groups.append(OperationFuser(fusible, fuse_ops=True))
                fusible = []

        for m in modules:
            if isinstance(m, FusibleOperation):
                fusible.append(m)
            else:
                maybe_add_fuser()
                groups.append(m)
        maybe_add_fuser()
        return groups

    def __call__(self, x):
        if self._module_groups is None:
            self._module_groups = self._make_module_groups(self._modules)
        lead = x.shape[:-1]
        y = x.reshape(-1, x.shape[-1])          # layout glue (plain JAX)
        for group in self._module_groups:
            y = group(y)
        return y.reshape(*lead, y.shape[-1])


# -----------------------------------------------------------------------------
# Pure-JAX references (emulate bf16 operand rounding / f32 accumulation)
# -----------------------------------------------------------------------------
def _emulate_bf16(a):
    return a.astype(jnp.bfloat16).astype(jnp.float32)


def _reference_mlp(x, w1, b1, w2, b2):
    lead = x.shape[:-1]
    xr = _emulate_bf16(x.reshape(-1, x.shape[-1]))
    h = xr @ _emulate_bf16(w1) + b1
    h = _gelu_f32(h)
    y = _emulate_bf16(h) @ _emulate_bf16(w2) + b2
    return y.reshape(*lead, -1)


def _reference_fallback(x, b_in, w1, w2, b_out):
    lead = x.shape[:-1]
    y = x.reshape(-1, x.shape[-1]) + b_in
    y = _emulate_bf16(y) @ _emulate_bf16(w1)
    y = _gelu_f32(y)
    y = _gelu_f32(y)
    y = _emulate_bf16(y) @ _emulate_bf16(w2) + b_out
    return y.reshape(*lead, -1)


if __name__ == "__main__":
    key = jax.random.PRNGKey(0)
    (k_x, k_w1, k_b1, k_w2, k_b2,
     k_x2, k_w3, k_b3, k_w4, k_b4) = jax.random.split(key, 10)

    batch, seq, hidden, ffn = 2, 8, 32, 128
    x = jax.random.normal(k_x, (batch, seq, hidden), jnp.float32)

    # --- main demo: one fully-fused MLP kernel ------------------------------
    model = Sequential(
        BasicLinear(hidden, ffn, k_w1),
        Bias(ffn, k_b1),
        GELU(),
        BasicLinear(ffn, hidden, k_w2),
        Bias(hidden, k_b2),
    )
    out = jax.block_until_ready(model(x))
    ref = _reference_mlp(
        x,
        model._modules[0].weight, model._modules[1].bias,
        model._modules[3].weight, model._modules[4].bias,
    )
    assert out.shape == (batch, seq, hidden)
    assert jnp.allclose(out, ref, atol=1e-2, rtol=1e-2), \
        float(jnp.max(jnp.abs(out - ref)))

    # --- fallback path: standalone bias/gelu + single fused linears ---------
    model2 = Sequential(
        Bias(hidden, k_b3),
        BasicLinear(hidden, ffn, k_w3),
        GELU(),
        GELU(),
        BasicLinear(ffn, 64, k_w4),
        Bias(64, k_b4),
    )
    x2 = jax.random.normal(k_x2, (batch, seq, hidden), jnp.float32)
    out2 = jax.block_until_ready(model2(x2))
    ref2 = _reference_fallback(
        x2,
        model2._modules[0].bias,
        model2._modules[1].weight,
        model2._modules[4].weight,
        model2._modules[5].bias,
    )
    assert out2.shape == (batch, seq, 64)
    assert jnp.allclose(out2, ref2, atol=1e-2, rtol=1e-2), \
        float(jnp.max(jnp.abs(out2 - ref2)))

    print("KERNEL_OK")
</pallas_src>

<mosaic_0001>
module attributes {stable_mosaic.version = 11 : i64} {
  func.func @_fused_mlp_kernel(%arg0: i32, %arg1: memref<8x32xbf16, #tpu.memory_space<vmem>>, %arg2: memref<32x128xbf16, #tpu.memory_space<vmem>>, %arg3: memref<1x128xf32, #tpu.memory_space<vmem>>, %arg4: memref<128x32xbf16, #tpu.memory_space<vmem>>, %arg5: memref<1x32xf32, #tpu.memory_space<vmem>>, %arg6: memref<8x32xf32, #tpu.memory_space<vmem>>) attributes {dimension_semantics = [#tpu.dimension_semantics<parallel>], iteration_bounds = array<i64: 2>, scalar_prefetch = 0 : i64, scratch_operands = 0 : i64, tpu.core_type = #tpu.core_type<tc>, window_params = [{transform_indices = @transform_0, window_bounds = array<i64: 8, 32>}, {pipeline_mode = #tpu.pipeline_mode<synchronous>, transform_indices = @transform_1, window_bounds = array<i64: 32, 128>}, {pipeline_mode = #tpu.pipeline_mode<synchronous>, transform_indices = @transform_2, window_bounds = array<i64: 1, 128>}, {pipeline_mode = #tpu.pipeline_mode<synchronous>, transform_indices = @transform_3, window_bounds = array<i64: 128, 32>}, {pipeline_mode = #tpu.pipeline_mode<synchronous>, transform_indices = @transform_4, window_bounds = array<i64: 1, 32>}, {transform_indices = @transform_5, window_bounds = array<i64: 8, 32>}]} {
    %c0 = arith.constant 0 : index
    %c0_0 = arith.constant 0 : index
    %0 = vector.load %arg1[%c0, %c0_0] : memref<8x32xbf16, #tpu.memory_space<vmem>>, vector<8x32xbf16>
    %c0_1 = arith.constant 0 : index
    %c0_2 = arith.constant 0 : index
    %1 = vector.load %arg2[%c0_1, %c0_2] : memref<32x128xbf16, #tpu.memory_space<vmem>>, vector<32x128xbf16>
    %cst = arith.constant dense<0.000000e+00> : vector<8x128xf32>
    %2 = tpu.matmul %0, %1, %cst {dimension_numbers = #tpu.dot_dimension_numbers<[1], [0], [0], [1], [0, 0, 1, 1], [], []>} : vector<8x32xbf16>, vector<32x128xbf16>, vector<8x128xf32> -> vector<8x128xf32>
    %c0_3 = arith.constant 0 : index
    %c0_4 = arith.constant 0 : index
    %3 = vector.load %arg3[%c0_3, %c0_4] : memref<1x128xf32, #tpu.memory_space<vmem>>, vector<1x128xf32>
    %4 = vector.broadcast %3 : vector<1x128xf32> to vector<8x128xf32>
    %5 = arith.addf %2, %4 : vector<8x128xf32>
    %cst_5 = arith.constant 5.000000e-01 : f32
    %6 = vector.broadcast %cst_5 : f32 to vector<8x128xf32>
    %7 = arith.mulf %6, %5 : vector<8x128xf32>
    %cst_6 = arith.constant 4.471500e-02 : f32
    %8 = vector.broadcast %cst_6 : f32 to vector<8x128xf32>
    %9 = arith.mulf %8, %5 : vector<8x128xf32>
    %10 = arith.mulf %9, %5 : vector<8x128xf32>
    %11 = arith.mulf %10, %5 : vector<8x128xf32>
    %12 = arith.addf %5, %11 : vector<8x128xf32>
    %cst_7 = arith.constant 0.797884583 : f32
    %13 = vector.broadcast %cst_7 : f32 to vector<8x128xf32>
    %14 = arith.mulf %13, %12 : vector<8x128xf32>
    %15 = math.tanh %14 : vector<8x128xf32>
    %cst_8 = arith.constant 1.000000e+00 : f32
    %16 = vector.broadcast %cst_8 : f32 to vector<8x128xf32>
    %17 = arith.addf %16, %15 : vector<8x128xf32>
    %18 = arith.mulf %7, %17 : vector<8x128xf32>
    %19 = arith.truncf %18 : vector<8x128xf32> to vector<8x128xbf16>
    %c0_9 = arith.constant 0 : index
    %c0_10 = arith.constant 0 : index
    %20 = vector.load %arg4[%c0_9, %c0_10] : memref<128x32xbf16, #tpu.memory_space<vmem>>, vector<128x32xbf16>
    %cst_11 = arith.constant dense<0.000000e+00> : vector<8x32xf32>
    %21 = tpu.matmul %19, %20, %cst_11 {dimension_numbers = #tpu.dot_dimension_numbers<[1], [0], [0], [1], [0, 0, 1, 1], [], []>} : vector<8x128xbf16>, vector<128x32xbf16>, vector<8x32xf32> -> vector<8x32xf32>
    %c0_12 = arith.constant 0 : index
    %c0_13 = arith.constant 0 : index
    %22 = vector.load %arg5[%c0_12, %c0_13] : memref<1x32xf32, #tpu.memory_space<vmem>>, vector<1x32xf32>
    %23 = vector.broadcast %22 : vector<1x32xf32> to vector<8x32xf32>
    %24 = arith.addf %21, %23 : vector<8x32xf32>
    %c0_14 = arith.constant 0 : index
    %c0_15 = arith.constant 0 : index
    %25 = vector.load %arg6[%c0_14, %c0_15] : memref<8x32xf32, #tpu.memory_space<vmem>>, vector<8x32xf32>
    tpu.vector_store %arg6[%c0_14, %c0_15], %24 {strides = array<i32>} : memref<8x32xf32, #tpu.memory_space<vmem>>, vector<8x32xf32>,
    return
  }
  func.func @transform_0(%arg0: i32) -> (i32, i32) {
    %c0_i32 = arith.constant 0 : i32
    %c0_i32_0 = arith.constant 0 : i32
    return %arg0, %c0_i32 : i32, i32
  }
  func.func @transform_1(%arg0: i32) -> (i32, i32) {
    %c0_i32 = arith.constant 0 : i32
    %c0_i32_0 = arith.constant 0 : i32
    %c0_i32_1 = arith.constant 0 : i32
    return %c0_i32, %c0_i32_0 : i32, i32
  }
  func.func @transform_2(%arg0: i32) -> (i32, i32) {
    %c0_i32 = arith.constant 0 : i32
    %c0_i32_0 = arith.constant 0 : i32
    %c0_i32_1 = arith.constant 0 : i32
    return %c0_i32, %c0_i32_0 : i32, i32
  }
  func.func @transform_3(%arg0: i32) -> (i32, i32) {
    %c0_i32 = arith.constant 0 : i32
    %c0_i32_0 = arith.constant 0 : i32
    %c0_i32_1 = arith.constant 0 : i32
    return %c0_i32, %c0_i32_0 : i32, i32
  }
  func.func @transform_4(%arg0: i32) -> (i32, i32) {
    %c0_i32 = arith.constant 0 : i32
    %c0_i32_0 = arith.constant 0 : i32
    %c0_i32_1 = arith.constant 0 : i32
    return %c0_i32, %c0_i32_0 : i32, i32
  }
  func.func @transform_5(%arg0: i32) -> (i32, i32) {
    %c0_i32 = arith.constant 0 : i32
    %c0_i32_0 = arith.constant 0 : i32
    return %arg0, %c0_i32 : i32, i32
  }
}

</mosaic_0001>

<bundles_post_ra>
// kernel: tpu_custom_call.1
= control target key start
LH: loop header
LB: loop body
LE: loop exit
PB: predicated region body
PF: predicated region fallthrough
CT: control target
= control target key end

     0   :  { %10 = vsyncpa [#allocation3], 0  ;;  %s832_s0 = inlined_call_operand.vmem [shape: bf16[16,32], index: 0, kind: input, shape index: {}]   ;;  %s833_s1 = inlined_call_operand.vmem [shape: bf16[32,128], index: 1, kind: input, shape index: {}]   ;;  %s834_s2 = inlined_call_operand.vmem [shape: f32[1,128], index: 2, kind: input, shape index: {}]   ;;  %s835_s3 = inlined_call_operand.vmem [shape: bf16[128,32], index: 3, kind: input, shape index: {}]   ;;  %s836_s4 = inlined_call_operand.vmem [shape: f32[1,32], index: 4, kind: input, shape index: {}]   ;;  %s837_s5 = inlined_call_operand.hbm [shape: f32[16,32], index: 5, kind: output, shape index: {}]  }
   0x1   :  { %12 = vsyncpa [#allocation3 + $0x1], 0  ;;  %s695_s18 = smov 0   ;;  %s697_s19 = smov 0  }
   0x2   :  { %s699_s20 = smov 0   ;;  %s701_s21 = smov 0  }
   0x3 LB: > { %s716_s22 = sadd.s32 4294967295, %s660_s21   ;;  %s484_s23 = sadd.s32 4294967294, %s660_s21   ;;  %s660_s21 = sphi %s701_s21, %s843_s21   ;;  %s656_s20 = sphi %s699_s20, %s842_s20   ;;  %s652_s19 = sphi %s697_s19, %s841_s19   ;;  %s648_s18 = sphi %s695_s18, %s840_s18  }
   0x4   : > { %s720_s24 = sadd.s32 1, %s660_s21   ;;  %s135_s25 = sadd.s32 1, %s656_s20 }
   0x5   : > { %s132_s26 = ssub.s32 %s660_s21, %s720_s24  ;;  %p145_p0 = scmp.ne.s32.totalorder %s656_s20, %s652_s19 }
   0x6   : > { %p133_p1 = scmp.eq.s32.totalorder %s132_s26, 0  ;;  %p146_p2 = scmp.eq.s32.totalorder %s716_s22, 1 }
   0x7   : > { %p151_p3 = scmp.ne.s32.totalorder %s652_s19, %s648_s18  ;;  %p152_p4 = scmp.eq.s32.totalorder %s484_s23, 1 }
   0x8   : > { %s731_s27 = scalar_select %p133_p1, %s656_s20, %s135_s25  }
   0x9   : > { %p733_p5 = por %p146_p2, %p145_p0  ;;  %p737_p6 = por %p152_p4, %p151_p3 }
   0xa   : > { %p487_p7 = scmp.ge.s32.totalorder %s660_s21, 1  ;;  %p189_p8 = scmp.lt.s32.totalorder %s660_s21, 3 }
   0xc   : > { %p190_p9 = pnand %p487_p7, %p189_p8 }
   0xd   : > { %p216_p10 = scmp.lt.s32.totalorder (!%p190_p9), %s716_s22, 1  ;;  %s213_s16 = sand.u32 (!%p190_p9), 1, %s652_s19  }
   0xe   : > { %193 = sbr.rel (%p190_p9) target bundleno = 462 (0x1ce), region = 40  ;;  %s488_s17 = sshll.u32 (!%p190_p9), %s213_s16, 3 }
   0xf   : > { %s504_s26 = sshll.u32 (!%p190_p9), %s716_s22, 7  ;;  %s215_s30 = scalar_lea.vmem (!%p190_p9), [#allocation2], %s488_s17 }
  0x10   : > { %s425_s6 = sshll.u32 (!%p190_p9), %s215_s30, 4  ;;  %s664_s11 = smov (!%p190_p9), [#allocation2]   ;;  %s792_s6 = int_to_ptr.vmem [resolvable:$true] %s425_s6 }
  0x11   : > { %s604_s12 = sshll.u32 (!%p190_p9), %s664_s11, 4  ;;  %s605_s12 = int_to_ptr.vmem [resolvable:$false] %s604_s12 }
  0x12   : > { %p607_p0 = scmp.lt.s32.totalorder (!%p190_p9), %s792_s6, %s605_s12 }
  0x13   : > { %v588_v0 = vld [vmem:[%s833_s1 + $0x8] sm:$0xff]   ;;  %v662_v1 = vmov 0.0   ;;  %v589_v2 = vld [vmem:[%s833_s1] sm:$0xff]   ;;  %vm663_vm0 = vmmov 0   ;;  %s217_s9 = scalar_select %p216_p10, %s716_s22, 1  ;;  %vm245_vm1 = vcmask 261120  }
  0x14   : > { %519 = vmatprep.subr.bf16.mxu0 %v662_v1  ;;  %527 = vmatprep.subr.bf16.mxu1 %v662_v1  ;;  %v590_v4 = vld [vmem:[%s835_s3 + $0x38] sm:$0xff]   ;;  %v591_v5 = vld [vmem:[%s835_s3 + $0x30] sm:$0xff]   ;;  %v592_v6 = vld [vmem:[%s835_s3 + $0x28] sm:$0xff]   ;;  %s600_s22 = scalar_lea.vmem %s792_s6, 128 }
  0x15   : > { %520 = vmatpush3.bf16.msra.mxu0 %v588_v0  ;;  %523 = vmatprep.mubr.msk.bf16.mxu0 %vm663_vm0, %v662_v1  ;;  %s489_s10 = sshll.u32 %s217_s9, 2  ;;  %v593_v7 = vld [vmem:[%s835_s3 + $0x20] sm:$0xff]   ;;  %v594_v8 = vld [vmem:[%s835_s3 + $0x18] sm:$0xff]   ;;  %v595_v9 = vld [vmem:[%s835_s3 + $0x10] sm:$0xff]   ;;  %s790_s9 = scalar_lea.hbm %s837_s5, %s504_s26 }
  0x16   : > { %521 = vmatprep.subr.bf16.mxu0 %v662_v1  ;;  %543 = vmatprep.mubr.msk.bf16.mxu1 %vm663_vm0, %v662_v1  ;;  %s219_s13 = scalar_lea.vmem %s832_s0, %s489_s10  ;;  %v596_v10 = vld [vmem:[%s835_s3 + $0x8] sm:$0xff]   ;;  %v597_v11 = vld [vmem:[%s835_s3] sm:$0xff]   ;;  %s412_s10 = scalar_lea.sflag [#allocation3], %s213_s16 }
  0x17   : > { %v221_v3 = vld [vmem:[%s219_s13] sm:$0xf]  ;;  %528 = vmatpush3.bf16.msra.mxu1 %v590_v4  ;;  %p601_p11 = scmp.ne.s32.totalorder %s792_s6, %s600_s22  ;;  %s606_s13 = scalar_lea.vmem %s605_s12, 256 }
  0x18   : > { %529 = vmatprep.subr.bf16.mxu1 %v662_v1  ;;  %v490_v12 = vld [vmem:[%s834_s2] ss:$0 sm:$0xff]  ;;  %p608_p1 = scmp.lt.s32.totalorder %s606_s13, %s600_s22 }
  0x19   : > { %522 = vmatpush3.bf16.msra.mxu0 %v589_v2  ;;  %v494_v28 = vld [vmem:[%s836_s4] ss:$0 sm:$0xff]  ;;  %p602_p12 = pnand %p601_p11, %p733_p5 }
  0x1a   : > { %p609_p2 = por %p608_p1, %p607_p0 }
  0x1b   : > { %530 = vmatpush3.bf16.msra.mxu1 %v591_v5  ;;  %p603_p13 = pneg %p602_p12 }
  0x1c   : > { %524 = vmatmul.mubr.msk.bf16.vlgmr.msra.gmra.mxu0 %vm245_vm1, %v221_v3  ;;  %531 = vmatprep.subr.bf16.mxu1 %v662_v1 }
  0x1d   : > { %p610_p3 = pnand %p609_p2, %p603_p13 }
  0x1f   : > { %532 = vmatpush3.bf16.msra.mxu1 %v592_v6 }
  0x20   : > { %533 = vmatprep.subr.bf16.mxu1 %v662_v1 }
  0x23   : > { %534 = vmatpush3.bf16.msra.mxu1 %v593_v7 }
  0x24   : > { %535 = vmatprep.subr.bf16.mxu1 %v662_v1 }
  0x27   : > { %536 = vmatpush3.bf16.msra.mxu1 %v594_v8 }
  0x28   : > { %537 = vmatprep.subr.bf16.mxu1 %v662_v1 }
  0x2b   : > { %538 = vmatpush3.bf16.msra.mxu1 %v595_v9 }
  0x2c   : > { %539 = vmatprep.subr.bf16.mxu1 %v662_v1 }
  0x2f   : > { %540 = vmatpush3.bf16.msra.mxu1 %v596_v10 }
  0x30   : > { %541 = vmatprep.subr.bf16.mxu1 %v662_v1 }
  0x33   : > { %542 = vmatpush3.bf16.msra.mxu1 %v597_v11 }
  0xdc   : > { %v283_v13 = vpop.f32.mrf.mxu0 }
  0xdd   : > { %v284_v14 = vadd.f32 %v490_v12, %v283_v13 }
  0xde   : > { %v525_v15 = vpop.f32.mrf.mxu0 }
  0xdf   : > { %v290_v16 = vmul.f32 0.044715, %v284_v14  ;;  %v289_v24 = vmul.f32 0.5, %v284_v14 }
  0xe0   : > { %v286_v17 = vpop.f32.mrf.mxu0 }
  0xe1   : > { %v291_v18 = vmul.f32 %v290_v16, %v284_v14 }
  0xe2   : > { %v526_v19 = vpop.f32.mrf.mxu0 }
  0xe3   : > { %v292_v20 = vmul.f32 %v291_v18, %v284_v14 }
  0xe5   : > { %v293_v21 = vadd.f32 %v292_v20, %v284_v14 }
  0xe7   : > { %v294_v22 = vmul.f32 0.7978846, %v293_v21 }
  0xe9   : > { %598 = vtanh.f32 %v294_v22 }
  0xf6   : > { %v599_v23 = vpop.eup %598 }
  0xf7   : > { %v296_v25 = vadd.f32 1.0, %v599_v23 }
  0xf9   : > { %v297_v26 = vmul.f32 %v296_v25, %v289_v24 }
  0xfb   : > { %v298_v27 = vpack.c.bf16 %v297_v26, %v297_v26 }
  0xfd   : > { %544 = vmatmul.mubr.bf16.vlgmr.msra.gmra.mxu1 %v298_v27 }
 0x1bd   : > { %v404_v29 = vpop.f32.mrf.mxu1 }
 0x1be   : > { %v405_v30 = vadd.f32 %v494_v28, %v404_v29 }
 0x1bf   : > { %v545_v31 = vpop.f32.mrf.mxu1 }
 0x1c0   : > { %410 = vst.msk [vmem:[%s215_s30] sm:$0xff] %vm245_vm1, %v405_v30 }
 0x1c1   : > { %v407_v32 = vpop.f32.mrf.mxu1 }
 0x1c2   : > { %613 = shalt.err (!%p610_p3)
}
 0x1c3   : > { %s614_s14 = scalar_lea.hbm %s790_s9, 128  ;;  %s618_s17 = scalar_lea.hbm %s837_s5, 256 }
 0x1c4   : > { %p615_p4 = scmp.ne.s32.totalorder %s790_s9, %s614_s14  ;;  %p619_p9 = scmp.lt.s32.totalorder %s790_s9, %s837_s5 }
 0x1c5   : > { %p620_p10 = scmp.lt.s32.totalorder %s618_s17, %s614_s14 }
 0x1c6   : > { %p616_p7 = pnand %p615_p4, %p733_p5 }
 0x1c7   : > { %p621_p11 = por %p620_p10, %p619_p9 }
 0x1c8   : > { %p617_p8 = pneg %p616_p7 }
 0x1ca   : > { %p622_p12 = pnand %p621_p11, %p617_p8 }
 0x1cc   : > { %625 = shalt.err (!%p622_p12)
}
 0x1cd   : > { %547 = dma.vmem_to_hbm [thread:$0]  (%p733_p5), %s792_s6, 128, %s790_s9, %s412_s10   ;;  %v546_v33 = vpop.f32.mrf.mxu1 }
 0x1ce PF: > { %p553_p13 = scmp.ge.s32.totalorder %s660_s21, 2  ;;  %s437_s26 = sand.u32 1, %s648_s18  }
 0x1cf   : > { %s438_s30 = scalar_lea.sflag [#allocation3], %s437_s26 }
 0x1d0   : > { %p550_p0 = pnand %p553_p13, %p737_p6 }
 0x1d2   : > { %p551_p1 = pneg %p550_p0 }
 0x1d4   : > { %643 = dma.done.wait (%p551_p1), %s438_s30, 128  }
 0x1d5   : > { %645 = vsyncadd (%p551_p1), %s438_s30, 4294967168  ;;  %p15_p2 = scmp.ge.s32.totalorder %s720_s24, 4   ;;  %s840_s18 = smov %s652_s19 }
 0x1d6   : > { %s841_s19 = smov %s656_s20  ;;  %s842_s20 = smov %s731_s27 }
 0x1d7   : > { %s843_s21 = smov %s720_s24  ;;  %17 = sbr.rel (!%p15_p2) target bundleno = 3 (0x3), region = 75 }
 0x1dc   :  { %443 = vsyncpa [#allocation3], 1 }
 0x1dd   :  { %445 = vsyncpa [#allocation3 + $0x1], 1 }

</bundles_post_ra>
